<compile_context>
chip_gen: v6e
topology: v6e:2x2x1
jax: 0.10.0
libtpu: 0.0.40
codegen_flags: <defaults>
</compile_context>

<pallas_src>
import functools

import jax
import jax.numpy as jnp
from jax.experimental import pallas as pl
from jax.experimental.pallas import tpu as pltpu

_BN_EPS = 1e-5
_LRELU_SLOPE = 0.2
_DEFAULT_VMEM_LIMIT = 48 * 1024 * 1024   # safe on v7x (64 MiB physical VMEM)


def _pick_vmem_limit():
    """Generation-aware VMEM budget: ~70% of physical, clamped to [32, 100] MiB."""
    try:
        cap = int(pltpu.get_tpu_info().vmem_capacity_bytes)
        return int(min(max((cap * 7) // 10, 32 << 20), 100 << 20))
    except Exception:
        return _DEFAULT_VMEM_LIMIT


# ---------------------------------------------------------------------------
# Kernel 1: per-channel BatchNorm batch statistics (mean, inv_std)
# ---------------------------------------------------------------------------
def _bn_stats_kernel(x_ref, mean_ref, rstd_ref, *, n_total, eps):
    i = pl.program_id(0)

    @pl.when(i == 0)
    def _init():
        mean_ref[...] = jnp.zeros_like(mean_ref)
        rstd_ref[...] = jnp.zeros_like(rstd_ref)

    x = x_ref[...].astype(jnp.float32)                       # [TR, W, C]
    mean_ref[...] += jnp.sum(x, axis=(0, 1)).reshape(1, -1)
    rstd_ref[...] += jnp.sum(x * x, axis=(0, 1)).reshape(1, -1)

    @pl.when(i == pl.num_programs(0) - 1)
    def _finalize():
        m = mean_ref[...] / n_total
        # NOTE: E[x^2]-E[x]^2 in f32 can cancel for huge N; acceptable here.
        v = jnp.maximum(rstd_ref[...] / n_total - m * m, 0.0)
        mean_ref[...] = m
        rstd_ref[...] = jax.lax.rsqrt(v + eps)


def bn_stats(x_nhwc, vmem_limit, eps=_BN_EPS):
    b, h, w, c = x_nhwc.shape
    rows = b * h
    bytes_per_row = w * c * 4
    cap = max(8, (2 << 20) // max(1, bytes_per_row))          # ~2 MiB blocks
    cap = 1 << (cap.bit_length() - 1)                         # pow2 floor
    tr = max(1, min(rows, cap))
    rows_p = ((rows + tr - 1) // tr) * tr
    xr = x_nhwc.reshape(rows, w, c)
    if rows_p != rows:                                        # zero rows: no effect on sums
        xr = jnp.concatenate(
            [xr, jnp.zeros((rows_p - rows, w, c), xr.dtype)], axis=0)

    kern = functools.partial(_bn_stats_kernel, n_total=float(rows * w), eps=eps)
    return pl.pallas_call(
        kern,
        grid=(rows_p // tr,),
        in_specs=[pl.BlockSpec((tr, w, c), lambda i: (i, 0, 0))],
        out_specs=(pl.BlockSpec((1, c), lambda i: (0, 0)),
                   pl.BlockSpec((1, c), lambda i: (0, 0))),
        out_shape=(jax.ShapeDtypeStruct((1, c), jnp.float32),
                   jax.ShapeDtypeStruct((1, c), jnp.float32)),
        compiler_params=pltpu.CompilerParams(
            dimension_semantics=("arbitrary",),
            vmem_limit_bytes=vmem_limit),
    )(xr)


# ---------------------------------------------------------------------------
# Kernel 2: fused CLADE modulation + KxK conv (+ residual) (+ nearest upsample)
# ---------------------------------------------------------------------------
def _make_fused_conv_kernel(*, ksize, height, width, tr, c_in, c_out,
                            num_labels, n_lrelu, upscale, res_mode,
                            emit_stats, merge_out):
    K, pad = ksize, ksize // 2
    H, W, TR, L, s = height, width, tr, num_labels, upscale

    def kernel(*refs):
        it = iter(refs)
        x_c_ref = next(it)       # (TR, W, C_in) center rows (auto-pipelined)
        x_any = next(it)         # whole input in HBM (halo DMAs)
        lbl_ref = next(it)       # (H, W, 1) label plane for this image
        mean_ref = next(it)
        rstd_ref = next(it)
        tab_ref = next(it)       # (L, 2*C_in) packed [gamma | beta]
        wk_ref = next(it)        # (K*K, C_in, C_out) bf16
        bias_ref = next(it)      # (1, C_out)
        if res_mode == "clade":
            xr_ref = next(it)
            mr_ref = next(it)
            rr_ref = next(it)
            tabr_ref = next(it)
            wres_ref = next(it)
        elif res_mode == "identity":
            xr_ref = next(it)
        o_ref = next(it)
        if emit_stats:
            ps_ref = next(it)
            ss_ref = next(it)
        y_buf = next(it)         # (TR+2p, W+2p, C_in) bf16 modulated tile
        xh_buf = next(it)        # (2p, W, C_in) halo rows
        sem = next(it)           # DMA sems (2,)

        bidx = pl.program_id(0)
        t = pl.program_id(1)
        r0 = pl.multiple_of(t * TR, TR)

        # --- kick the tiny halo DMAs first so they hide behind the prologue ---
        if pad > 0:
            top_start = jnp.clip(r0 - pad, 0, H - pad)
            bot_start = jnp.clip(r0 + TR, 0, H - pad)
            top_cp = pltpu.make_async_copy(
                x_any.at[bidx, pl.ds(top_start, pad)],
                xh_buf.at[pl.ds(0, pad)], sem.at[0])
            bot_cp = pltpu.make_async_copy(
                x_any.at[bidx, pl.ds(bot_start, pad)],
                xh_buf.at[pl.ds(pad, pad)], sem.at[1])
            top_cp.start()
            bot_cp.start()

        mean = mean_ref[...]
        rstd = rstd_ref[...]
        tab = tab_ref[...]
        bias = bias_ref[...]
        iota_l = jax.lax.broadcasted_iota(jnp.int32, (1, L), 1)

        def onehot_of(lbl_rows):                 # (R, W, 1) int32 -> (R*W, L) f32
            n = lbl_rows.shape[0] * W
            return (lbl_rows.reshape(n, 1) == iota_l).astype(jnp.float32)

        def modulate(x_rows, onehot, mu, rs, table, c, n_act):
            # BN normalize + class-affine via one-hot MXU matmul + LeakyReLUs.
            n = onehot.shape[0]
            xhat = (x_rows.reshape(n, c).astype(jnp.float32) - mu) * rs
            gb = jnp.dot(onehot, table, preferred_element_type=jnp.float32)
            y = gb[:, :c] * xhat + gb[:, c:]
            for _ in range(n_act):
                y = jnp.where(y >= 0.0, y, _LRELU_SLOPE * y)
            return y                              # (n, c) f32

        lbl_c = lbl_ref[pl.ds(r0, TR)]            # (TR, W, 1)
        oh_c = onehot_of(lbl_c)                   # (TR*W, L), reused by residual

        # zero the column halo of the modulated tile (conv zero padding)
        if pad > 0:
            zcol = jnp.zeros((TR + 2 * pad, pad, c_in), jnp.bfloat16)
            y_buf[:, 0:pad, :] = zcol
            y_buf[:, pad + W:pad + W + pad, :] = zcol

        # modulate the TR center rows once, store bf16 into the scratch tile
        y_c = modulate(x_c_ref[...], oh_c, mean, rstd, tab, c_in, n_lrelu)
        y_buf[pad:pad + TR, pad:pad + W, :] = (
            y_c.reshape(TR, W, c_in).astype(jnp.bfloat16))

        # modulate the 2*pad halo rows (recomputed per tile), zero if off-image
        if pad > 0:
            abs_rows, lbl_rows = [], []
            for j in range(2 * pad):
                ar = (r0 - pad + j) if j < pad else (r0 + TR + (j - pad))
                abs_rows.append(ar)
                lbl_rows.append(lbl_ref[pl.ds(jnp.clip(ar, 0, H - 1), 1)])
            lbl_h = jnp.concatenate(lbl_rows, axis=0)          # (2p, W, 1)
            oh_h = onehot_of(lbl_h)
            top_cp.wait()
            bot_cp.wait()
            y_h = modulate(xh_buf[...], oh_h, mean, rstd, tab, c_in, n_lrelu)
            y_h = y_h.reshape(2 * pad, W, c_in)
            valid = jnp.stack(
                [jnp.logical_and(ar >= 0, ar <= H - 1) for ar in abs_rows])
            y_h = jnp.where(valid.reshape(2 * pad, 1, 1), y_h, 0.0)
            y_h = y_h.astype(jnp.bfloat16)
            y_buf[0:pad, pad:pad + W, :] = y_h[0:pad]
            y_buf[pad + TR:pad + TR + pad, pad:pad + W, :] = y_h[pad:2 * pad]

        # KxK conv as K*K accumulated MXU matmuls on [TR*W, C_in] slabs.
        acc = jnp.zeros((TR * W, c_out), jnp.float32)
        for kh in range(K):
            for kw in range(K):
                patch = y_buf[kh:kh + TR, kw:kw + W, :]        # static slice
                acc = acc + jnp.dot(patch.reshape(TR * W, c_in),
                                    wk_ref[kh * K + kw],
                                    preferred_element_type=jnp.float32)
        out = acc + bias                                       # (TR*W, C_out) f32

        # residual epilogue
        if res_mode == "clade":
            c_res = xr_ref.shape[-1]
            yr = modulate(xr_ref[...], oh_c, mr_ref[...], rr_ref[...],
                          tabr_ref[...], c_res, 0)
            out = out + jnp.dot(yr.astype(jnp.bfloat16), wres_ref[...],
                                preferred_element_type=jnp.float32)
        elif res_mode == "identity":
            out = out + xr_ref[...].reshape(TR * W, c_out).astype(jnp.float32)

        # fused BN partial stats for the next modulation (no extra HBM pass)
        if emit_stats:
            ps_ref[...] = jnp.sum(out, axis=0, keepdims=True)
            ss_ref[...] = jnp.sum(out * out, axis=0, keepdims=True)

        # store (lane-dense, single broadcast store for the nearest upsample)
        if s > 1:
            o3 = out.reshape(TR, W, c_out)
            rep = jnp.concatenate([o3] * s, axis=-1)           # (TR, W, s*C_out)
            if merge_out:
                rep = rep.reshape(TR, 1, W * s * c_out)
                o_ref[...] = jnp.broadcast_to(
                    rep, (TR, s, W * s * c_out)).astype(o_ref.dtype)
            else:
                o_ref[...] = jnp.broadcast_to(
                    rep[:, None, :, :], (TR, s, W, s * c_out)).astype(o_ref.dtype)
        else:
            if merge_out:
                o_ref[...] = out.reshape(TR, W * c_out).astype(o_ref.dtype)
            else:
                o_ref[...] = out.reshape(TR, W, c_out).astype(o_ref.dtype)

    return kernel


def _pick_row_tile(h, per_row_bytes, fixed_bytes, vmem_limit):
    budget = max(1 << 20, vmem_limit // 3 - fixed_bytes)
    cap = max(1, min(256, budget // max(1, per_row_bytes)))
    tr = 1
    for d in range(1, h + 1):
        if h % d == 0 and d <= cap:
            tr = d
    return tr


def fused_clade_conv(x, labels, mean, rstd, aff_table, w_kk, bias2d, *,
                     n_lrelu, upscale, out_dtype, res_mode="none",
                     res_args=(), emit_stats=False,
                     vmem_limit=_DEFAULT_VMEM_LIMIT):
    b, h, w, c_in = x.shape
    kk, _, c_out = w_kk.shape
    ksize = int(round(kk ** 0.5))
    assert ksize * ksize == kk and ksize % 2 == 1
    pad = ksize // 2
    num_labels = aff_table.shape[0]

    c_res = 0
    if res_mode == "clade":
        c_res = res_args[0].shape[-1]
    elif res_mode == "identity":
        c_res = c_out
        assert res_args[0].shape[-1] == c_out, "identity residual needs Cin == Cout"

    # VMEM-aware row-tile size (counts the upscale^2-expanded output block).
    per_row = (2 * w * c_in * x.dtype.itemsize            # double-buffered input
               + (w + 2 * pad) * c_in * 2                 # bf16 modulated scratch
               + 2 * w * (upscale ** 2) * c_out * 4       # output block(s)
               + 2 * w * c_res * 4)                       # residual block
    fixed = (2 * h * w * 4                                # label plane
             + 2 * kk * c_in * c_out * 2                  # conv weights
             + 4 * aff_table.size
             + 2 * pad * w * c_in * 4)
    tr = _pick_row_tile(h, per_row, fixed, vmem_limit)
    n_tiles = h // tr

    # Merge the trailing dims of the output when the natural last dim is narrow
    # (< 128 lanes) so stores are unmasked / lane-dense.
    last_dim = upscale * c_out if upscale > 1 else c_out
    merge_out = (last_dim < 128) and (tr % 8 == 0 or tr == h)

    in_specs = [
        pl.BlockSpec((None, tr, w, c_in), lambda bi, ti: (bi, ti, 0, 0)),
        pl.BlockSpec(memory_space=pl.ANY),                         # halo source
        pl.BlockSpec((None, h, w, 1), lambda bi, ti: (bi, 0, 0, 0)),
        pl.BlockSpec((1, c_in), lambda bi, ti: (0, 0)),
        pl.BlockSpec((1, c_in), lambda bi, ti: (0, 0)),
        pl.BlockSpec(aff_table.shape, lambda bi, ti: (0, 0)),
        pl.BlockSpec(w_kk.shape, lambda bi, ti: (0, 0, 0)),
        pl.BlockSpec((1, c_out), lambda bi, ti: (0, 0)),
    ]
    inputs = [x, x, labels, mean, rstd, aff_table, w_kk, bias2d]

    if res_mode == "clade":
        x_res, mean_r, rstd_r, tab_r, w_res = res_args
        in_specs += [
            pl.BlockSpec((None, tr, w, c_res), lambda bi, ti: (bi, ti, 0, 0)),
            pl.BlockSpec((1, c_res), lambda bi, ti: (0, 0)),
            pl.BlockSpec((1, c_res), lambda bi, ti: (0, 0)),
            pl.BlockSpec(tab_r.shape, lambda bi, ti: (0, 0)),
            pl.BlockSpec(w_res.shape, lambda bi, ti: (0, 0)),
        ]
        inputs += [x_res, mean_r, rstd_r, tab_r, w_res]
    elif res_mode == "identity":
        (x_res,) = res_args
        in_specs += [pl.BlockSpec((None, tr, w, c_out),
                                  lambda bi, ti: (bi, ti, 0, 0))]
        inputs += [x_res]

    if upscale > 1:
        if merge_out:
            o_shape = (b, h, upscale, w * upscale * c_out)
            o_spec = pl.BlockSpec((None, tr, upscale, w * upscale * c_out),
                                  lambda bi, ti: (bi, ti, 0, 0))
        else:
            o_shape = (b, h, upscale, w, upscale * c_out)
            o_spec = pl.BlockSpec((None, tr, upscale, w, upscale * c_out),
                                  lambda bi, ti: (bi, ti, 0, 0, 0))
    else:
        if merge_out:
            o_shape = (b, h, w * c_out)
            o_spec = pl.BlockSpec((None, tr, w * c_out),
                                  lambda bi, ti: (bi, ti, 0))
        else:
            o_shape = (b, h, w, c_out)
            o_spec = pl.BlockSpec((None, tr, w, c_out),
                                  lambda bi, ti: (bi, ti, 0, 0))

    if emit_stats:
        out_shape = (jax.ShapeDtypeStruct(o_shape, out_dtype),
                     jax.ShapeDtypeStruct((b, n_tiles, 1, c_out), jnp.float32),
                     jax.ShapeDtypeStruct((b, n_tiles, 1, c_out), jnp.float32))
        out_specs = (o_spec,
                     pl.BlockSpec((None, None, 1, c_out),
                                  lambda bi, ti: (bi, ti, 0, 0)),
                     pl.BlockSpec((None, None, 1, c_out),
                                  lambda bi, ti: (bi, ti, 0, 0)))
    else:
        out_shape = jax.ShapeDtypeStruct(o_shape, out_dtype)
        out_specs = o_spec

    scratch_shapes = [
        pltpu.VMEM((tr + 2 * pad, w + 2 * pad, c_in), jnp.bfloat16),
        pltpu.VMEM((max(2 * pad, 1), w, c_in), x.dtype),
        pltpu.SemaphoreType.DMA((2,)),
    ]

    kern = _make_fused_conv_kernel(
        ksize=ksize, height=h, width=w, tr=tr, c_in=c_in, c_out=c_out,
        num_labels=num_labels, n_lrelu=n_lrelu, upscale=upscale,
        res_mode=res_mode, emit_stats=emit_stats, merge_out=merge_out)

    res = pl.pallas_call(
        kern,
        grid=(b, n_tiles),
        in_specs=in_specs,
        out_specs=out_specs,
        out_shape=out_shape,
        scratch_shapes=scratch_shapes,
        compiler_params=pltpu.CompilerParams(
            dimension_semantics=("parallel", "parallel"),   # megacore-friendly
            vmem_limit_bytes=vmem_limit),
    )(*inputs)

    if emit_stats:
        out_raw, ps, ss = res
    else:
        out_raw = res

    if upscale > 1:
        out_nhwc = out_raw.reshape(b, h * upscale, w * upscale, c_out)   # free
    else:
        out_nhwc = out_raw.reshape(b, h, w, c_out)                       # free
    return (out_nhwc, ps, ss) if emit_stats else out_nhwc


# ---------------------------------------------------------------------------
# Glue: nearest resize (F.interpolate, mode='nearest'), weight prep, params
# ---------------------------------------------------------------------------
def nearest_resize_nchw(seg, h_out, w_out):
    _, _, h_in, w_in = seg.shape
    hi = (jnp.arange(h_out) * h_in // h_out).astype(jnp.int32)
    wi = (jnp.arange(w_out) * w_in // w_out).astype(jnp.int32)
    return seg[:, :, hi[:, None], wi[None, :]]


def _conv_w_to_kk(w_oihw, dtype=jnp.bfloat16):
    c_out, c_in, k, _ = w_oihw.shape
    return jnp.transpose(w_oihw, (2, 3, 1, 0)).reshape(k * k, c_in, c_out).astype(dtype)


def spectral_normalize(w, key, n_iter=1, eps=1e-12):
    out_c = w.shape[0]
    w_mat = w.reshape(out_c, -1)
    u = jax.random.normal(key, (out_c,), jnp.float32)
    u = u / (jnp.linalg.norm(u) + eps)
    v = None
    for _ in range(n_iter):
        v = w_mat.T @ u
        v = v / (jnp.linalg.norm(v) + eps)
        u = w_mat @ v
        u = u / (jnp.linalg.norm(u) + eps)
    sigma = u @ (w_mat @ v)
    return w / sigma


def init_params(key, input_dim, output_dim, num_labels, kernel_size):
    middle_dim = min(input_dim, output_dim)
    keys = jax.random.split(key, 12)

    def conv_w(k, o, i, ks):
        return jax.random.normal(k, (o, i, ks, ks), jnp.float32) * 0.1

    params = {'resnet_connection': input_dim != output_dim}
    params['mod_0_w'] = jax.random.uniform(keys[0], (num_labels, input_dim), jnp.float32)
    params['mod_0_b'] = jnp.zeros((num_labels, input_dim), jnp.float32)
    params['mod_1_w'] = jax.random.uniform(keys[1], (num_labels, middle_dim), jnp.float32)
    params['mod_1_b'] = jnp.zeros((num_labels, middle_dim), jnp.float32)
    params['conv_0_w'] = spectral_normalize(
        conv_w(keys[2], middle_dim, input_dim, kernel_size), keys[3])
    params['conv_0_b'] = jax.random.normal(keys[4], (middle_dim,), jnp.float32) * 0.01
    params['conv_1_w'] = spectral_normalize(
        conv_w(keys[5], output_dim, middle_dim, kernel_size), keys[6])
    params['conv_1_b'] = jax.random.normal(keys[7], (output_dim,), jnp.float32) * 0.01
    if params['resnet_connection']:
        params['mod_res_w'] = jax.random.uniform(keys[8], (num_labels, input_dim), jnp.float32)
        params['mod_res_b'] = jnp.zeros((num_labels, input_dim), jnp.float32)
        params['conv_res_w'] = spectral_normalize(
            conv_w(keys[9], output_dim, input_dim, 1), keys[10])
    return params


# ---------------------------------------------------------------------------
# Full CLADEResUpscale forward
# ---------------------------------------------------------------------------
def clade_res_upscale_forward(params, x_nchw, seg_nchw, upscale_size):
    b, c_in, h, w = x_nchw.shape
    scale = int(upscale_size) if upscale_size else 1
    vmem_limit = _pick_vmem_limit()

    x = jnp.transpose(x_nchw, (0, 2, 3, 1)).astype(jnp.float32)        # NHWC
    seg_r = nearest_resize_nchw(seg_nchw, h, w)
    labels = jnp.argmax(seg_r, axis=1).astype(jnp.int32)[..., None]    # [B,H,W,1]

    mean_x, rstd_x = bn_stats(x, vmem_limit)     # shared by mod_0 and mod_res

    w0 = _conv_w_to_kk(params['conv_0_w'])
    b0 = params['conv_0_b'].reshape(1, -1).astype(jnp.float32)
    w1 = _conv_w_to_kk(params['conv_1_w'])
    b1 = params['conv_1_b'].reshape(1, -1).astype(jnp.float32)
    tab0 = jnp.concatenate([params['mod_0_w'], params['mod_0_b']],
                           axis=1).astype(jnp.float32)                 # [L, 2*Cin]
    tab1 = jnp.concatenate([params['mod_1_w'], params['mod_1_b']],
                           axis=1).astype(jnp.float32)

    # dx = conv_0(lrelu(lrelu(mod_0(x)))) ; per-tile sum/sumsq of dx fused in.
    dx, ps, ss = fused_clade_conv(
        x, labels, mean_x, rstd_x, tab0, w0, b0,
        n_lrelu=2, upscale=1, out_dtype=jnp.bfloat16,
        res_mode="none", emit_stats=True, vmem_limit=vmem_limit)

    n_d = float(b * h * w)
    s1 = jnp.sum(ps, axis=(0, 1, 2)).reshape(1, -1)
    s2 = jnp.sum(ss, axis=(0, 1, 2)).reshape(1, -1)
    mean_d = s1 / n_d
    var_d = jnp.maximum(s2 / n_d - mean_d * mean_d, 0.0)
    rstd_d = jax.lax.rsqrt(var_d + _BN_EPS)

    if params['resnet_connection']:
        w_res = params['conv_res_w'].reshape(
            params['conv_res_w'].shape[0], -1).T.astype(jnp.bfloat16)  # [Cin, Cout]
        tab_r = jnp.concatenate([params['mod_res_w'], params['mod_res_b']],
                                axis=1).astype(jnp.float32)
        res_mode = "clade"
        res_args = (x, mean_x, rstd_x, tab_r, w_res)
    else:
        res_mode = "identity"
        res_args = (x,)

    # out = x_res + conv_1(lrelu(lrelu(mod_1(dx))))  fused with nearest upsample
    out = fused_clade_conv(
        dx, labels, mean_d, rstd_d, tab1, w1, b1,
        n_lrelu=2, upscale=scale, out_dtype=jnp.float32,
        res_mode=res_mode, res_args=res_args,
        emit_stats=False, vmem_limit=vmem_limit)

    return jnp.transpose(out, (0, 3, 1, 2))                            # NCHW


if __name__ == "__main__":
    key = jax.random.PRNGKey(0)
    batch, input_dim, output_dim, num_labels = 2, 8, 4, 5
    height = width = 16
    kernel_size = 3
    upscale_size = 2

    k_x, k_seg, k_p = jax.random.split(key, 3)
    x = jax.random.normal(k_x, (batch, input_dim, height, width), jnp.float32)
    seg = jax.random.normal(k_seg, (batch, num_labels, height, width), jnp.float32)
    params = init_params(k_p, input_dim, output_dim, num_labels, kernel_size)

    out = clade_res_upscale_forward(params, x, seg, upscale_size)
    out = jax.block_until_ready(out)
    assert out.shape == (batch, output_dim, height * upscale_size, width * upscale_size)
    assert bool(jnp.all(jnp.isfinite(out)))
    print("KERNEL_OK")
</pallas_src>

<mosaic_0001>
module attributes {stable_mosaic.version = 11 : i64} {
  func.func @_bn_stats_kernel(%arg0: i32, %arg1: memref<32x16x8xf32, #tpu.memory_space<vmem>>, %arg2: memref<1x8xf32, #tpu.memory_space<vmem>>, %arg3: memref<1x8xf32, #tpu.memory_space<vmem>>) attributes {dimension_semantics = [#tpu.dimension_semantics<arbitrary>], iteration_bounds = array<i64: 1>, scalar_prefetch = 0 : i64, scratch_operands = 0 : i64, tpu.core_type = #tpu.core_type<tc>, window_params = [{transform_indices = @transform_0, window_bounds = array<i64: 32, 16, 8>}, {pipeline_mode = #tpu.pipeline_mode<synchronous>, transform_indices = @transform_1, window_bounds = array<i64: 1, 8>}, {pipeline_mode = #tpu.pipeline_mode<synchronous>, transform_indices = @transform_2, window_bounds = array<i64: 1, 8>}]} {
    %c0_i32 = arith.constant 0 : i32
    %0 = arith.cmpi eq, %arg0, %c0_i32 : i32
    %1 = arith.extui %0 : i1 to i32
    %c0_i32_0 = arith.constant 0 : i32
    %2 = arith.cmpi ne, %1, %c0_i32_0 : i32
    scf.if %2 {
      %cst_14 = arith.constant 0.000000e+00 : f32
      %18 = vector.broadcast %cst_14 : f32 to vector<1x8xf32>
      %c0_15 = arith.constant 0 : index
      %c0_16 = arith.constant 0 : index
      %19 = vector.load %arg2[%c0_15, %c0_16] : memref<1x8xf32, #tpu.memory_space<vmem>>, vector<1x8xf32>
      tpu.vector_store %arg2[%c0_15, %c0_16], %18 {strides = array<i32>} : memref<1x8xf32, #tpu.memory_space<vmem>>, vector<1x8xf32>,
      %cst_17 = arith.constant 0.000000e+00 : f32
      %20 = vector.broadcast %cst_17 : f32 to vector<1x8xf32>
      %c0_18 = arith.constant 0 : index
      %c0_19 = arith.constant 0 : index
      %21 = vector.load %arg3[%c0_18, %c0_19] : memref<1x8xf32, #tpu.memory_space<vmem>>, vector<1x8xf32>
      tpu.vector_store %arg3[%c0_18, %c0_19], %20 {strides = array<i32>} : memref<1x8xf32, #tpu.memory_space<vmem>>, vector<1x8xf32>,
    } else {
    }
    %c0 = arith.constant 0 : index
    %c0_1 = arith.constant 0 : index
    %c0_2 = arith.constant 0 : index
    %3 = vector.load %arg1[%c0, %c0_1, %c0_2] : memref<32x16x8xf32, #tpu.memory_space<vmem>>, vector<32x16x8xf32>
    %c0_3 = arith.constant 0 : index
    %c0_4 = arith.constant 0 : index
    %4 = vector.load %arg2[%c0_3, %c0_4] : memref<1x8xf32, #tpu.memory_space<vmem>>, vector<1x8xf32>
    %cst = arith.constant dense<0.000000e+00> : vector<8xf32>
    %5 = vector.multi_reduction <add>, %3, %cst [0, 1] : vector<32x16x8xf32> to vector<8xf32>
    %6 = vector.shape_cast %5 : vector<8xf32> to vector<1x8xf32>
    %7 = arith.addf %4, %6 : vector<1x8xf32>
    %c0_5 = arith.constant 0 : index
    %c0_6 = arith.constant 0 : index
    %8 = vector.load %arg2[%c0_5, %c0_6] : memref<1x8xf32, #tpu.memory_space<vmem>>, vector<1x8xf32>
    tpu.vector_store %arg2[%c0_5, %c0_6], %7 {strides = array<i32>} : memref<1x8xf32, #tpu.memory_space<vmem>>, vector<1x8xf32>,
    %c0_7 = arith.constant 0 : index
    %c0_8 = arith.constant 0 : index
    %9 = vector.load %arg3[%c0_7, %c0_8] : memref<1x8xf32, #tpu.memory_space<vmem>>, vector<1x8xf32>
    %10 = arith.mulf %3, %3 : vector<32x16x8xf32>
    %cst_9 = arith.constant dense<0.000000e+00> : vector<8xf32>
    %11 = vector.multi_reduction <add>, %10, %cst_9 [0, 1] : vector<32x16x8xf32> to vector<8xf32>
    %12 = vector.shape_cast %11 : vector<8xf32> to vector<1x8xf32>
    %13 = arith.addf %9, %12 : vector<1x8xf32>
    %c0_10 = arith.constant 0 : index
    %c0_11 = arith.constant 0 : index
    %14 = vector.load %arg3[%c0_10, %c0_11] : memref<1x8xf32, #tpu.memory_space<vmem>>, vector<1x8xf32>
    tpu.vector_store %arg3[%c0_10, %c0_11], %13 {strides = array<i32>} : memref<1x8xf32, #tpu.memory_space<vmem>>, vector<1x8xf32>,
    %c0_i32_12 = arith.constant 0 : i32
    %15 = arith.cmpi eq, %arg0, %c0_i32_12 : i32
    %16 = arith.extui %15 : i1 to i32
    %c0_i32_13 = arith.constant 0 : i32
    %17 = arith.cmpi ne, %16, %c0_i32_13 : i32
    scf.if %17 {
      %c0_14 = arith.constant 0 : index
      %c0_15 = arith.constant 0 : index
      %18 = vector.load %arg2[%c0_14, %c0_15] : memref<1x8xf32, #tpu.memory_space<vmem>>, vector<1x8xf32>
      %cst_16 = arith.constant 5.120000e+02 : f32
      %19 = vector.broadcast %cst_16 : f32 to vector<1x8xf32>
      %20 = arith.divf %18, %19 : vector<1x8xf32>
      %c0_17 = arith.constant 0 : index
      %c0_18 = arith.constant 0 : index
      %21 = vector.load %arg3[%c0_17, %c0_18] : memref<1x8xf32, #tpu.memory_space<vmem>>, vector<1x8xf32>
      %cst_19 = arith.constant 5.120000e+02 : f32
      %22 = vector.broadcast %cst_19 : f32 to vector<1x8xf32>
      %23 = arith.divf %21, %22 : vector<1x8xf32>
      %24 = arith.mulf %20, %20 : vector<1x8xf32>
      %25 = arith.subf %23, %24 : vector<1x8xf32>
      %cst_20 = arith.constant 0.000000e+00 : f32
      %26 = vector.broadcast %cst_20 : f32 to vector<1x8xf32>
      %27 = arith.maximumf %25, %26 : vector<1x8xf32>
      %c0_21 = arith.constant 0 : index
      %c0_22 = arith.constant 0 : index
      %28 = vector.load %arg2[%c0_21, %c0_22] : memref<1x8xf32, #tpu.memory_space<vmem>>, vector<1x8xf32>
      tpu.vector_store %arg2[%c0_21, %c0_22], %20 {strides = array<i32>} : memref<1x8xf32, #tpu.memory_space<vmem>>, vector<1x8xf32>,
      %cst_23 = arith.constant 9.99999974E-6 : f32
      %29 = vector.broadcast %cst_23 : f32 to vector<1x8xf32>
      %30 = arith.addf %27, %29 : vector<1x8xf32>
      %31 = math.rsqrt %30 : vector<1x8xf32>
      %c0_24 = arith.constant 0 : index
      %c0_25 = arith.constant 0 : index
      %32 = vector.load %arg3[%c0_24, %c0_25] : memref<1x8xf32, #tpu.memory_space<vmem>>, vector<1x8xf32>
      tpu.vector_store %arg3[%c0_24, %c0_25], %31 {strides = array<i32>} : memref<1x8xf32, #tpu.memory_space<vmem>>, vector<1x8xf32>,
    } else {
    }
    return
  }
  func.func @transform_0(%arg0: i32) -> (i32, i32, i32) {
    %c0_i32 = arith.constant 0 : i32
    %c0_i32_0 = arith.constant 0 : i32
    %c0_i32_1 = arith.constant 0 : i32
    return %arg0, %c0_i32, %c0_i32_0 : i32, i32, i32
  }
  func.func @transform_1(%arg0: i32) -> (i32, i32) {
    %c0_i32 = arith.constant 0 : i32
    %c0_i32_0 = arith.constant 0 : i32
    %c0_i32_1 = arith.constant 0 : i32
    return %c0_i32, %c0_i32_0 : i32, i32
  }
  func.func @transform_2(%arg0: i32) -> (i32, i32) {
    %c0_i32 = arith.constant 0 : i32
    %c0_i32_0 = arith.constant 0 : i32
    %c0_i32_1 = arith.constant 0 : i32
    return %c0_i32, %c0_i32_0 : i32, i32
  }
}

</mosaic_0001>

<bundles_post_ra>
// kernel: tpu_custom_call.1
= control target key start
LH: loop header
LB: loop body
LE: loop exit
PB: predicated region body
PF: predicated region fallthrough
CT: control target
= control target key end

     0   :  { %8 = vsyncpa [#allocation3], 0  ;;  %vm16_vm0 = vcmask 57344   ;;  %vm84_vm1 = vcmask 64512   ;;  %v513_v3 = vmov 0.0   ;;  %s1158_s0 = inlined_call_operand.vmem [shape: f32[32,16,8], index: 0, kind: input, shape index: {}]   ;;  %s1159_s1 = inlined_call_operand.hbm [shape: f32[1,8], index: 1, kind: output, shape index: {0}]   ;;  %s1160_s2 = inlined_call_operand.hbm [shape: f32[1,8], index: 2, kind: output, shape index: {1}]  }
   0x1   :  { %v19_v0 = vld [vmem:[%s1158_s0] sm:$0xff]  ;;  %v20_v1 = vld [vmem:[%s1158_s0 + $0x8] sm:$0xff]  ;;  %v21_v2 = vld [vmem:[%s1158_s0 + $0x10] sm:$0xff]  ;;  %17 = vst.msk [vmem:[#allocation2] sm:$0x1] %vm16_vm0, %v513_v3 }
   0x2   :  { %18 = vst.msk [vmem:[#allocation4] sm:$0x1] %vm16_vm0, %v513_v3  ;;  %v22_v4 = vld [vmem:[%s1158_s0 + $0x18] sm:$0xff]  ;;  %v85_v5 = vsel %vm84_vm1, %v19_v0, 0.0  ;;  %v86_v6 = vsel %vm84_vm1, %v20_v1, 0.0  ;;  %v88_v7 = vsel %vm84_vm1, %v21_v2, 0.0 }
   0x3   :  { %v23_v8 = vld [vmem:[%s1158_s0 + $0x20] sm:$0xff]  ;;  %v87_v9 = vadd.f32 %v86_v6, %v85_v5  ;;  %v90_v10 = vsel %vm84_vm1, %v22_v4, 0.0  ;;  %v555_v11 = vld [vmem:[%s1158_s0 + $0x28] sm:$0xff]  ;;  %v561_v14 = vld [vmem:[%s1158_s0 + $0x30] sm:$0xff] }
   0x4   :  { %v92_v13 = vsel %vm84_vm1, %v23_v8, 0.0  ;;  %v94_v16 = vsel %vm84_vm1, %v555_v11, 0.0  ;;  %v568_v17 = vld [vmem:[%s1158_s0 + $0x38] sm:$0xff]  ;;  %v96_v19 = vsel %vm84_vm1, %v561_v14, 0.0  ;;  %v575_v20 = vld [vmem:[%s1158_s0 + $0x40] sm:$0xff]  ;;  %v582_v23 = vld [vmem:[%s1158_s0 + $0x48] sm:$0xff] }
   0x5   :  { %v89_v12 = vadd.f32 %v88_v7, %v87_v9  ;;  %v98_v22 = vsel %vm84_vm1, %v568_v17, 0.0  ;;  %v100_v25 = vsel %vm84_vm1, %v575_v20, 0.0  ;;  %v589_v26 = vld [vmem:[%s1158_s0 + $0x50] sm:$0xff]  ;;  %v102_v28 = vsel %vm84_vm1, %v582_v23, 0.0  ;;  %v596_v29 = vld [vmem:[%s1158_s0 + $0x58] sm:$0xff]  ;;  %v603_v32 = vld [vmem:[%s1158_s0 + $0x60] sm:$0xff] }
   0x6   :  { %v104_v31 = vsel %vm84_vm1, %v589_v26, 0.0  ;;  %v106_v34 = vsel %vm84_vm1, %v596_v29, 0.0  ;;  %v610_v35 = vld [vmem:[%s1158_s0 + $0x68] sm:$0xff]  ;;  %v108_v37 = vsel %vm84_vm1, %v603_v32, 0.0  ;;  %v617_v38 = vld [vmem:[%s1158_s0 + $0x70] sm:$0xff] }
   0x7   :  { %v91_v15 = vadd.f32 %v90_v10, %v89_v12 }
   0x9   :  { %v93_v18 = vadd.f32 %v92_v13, %v91_v15 }
   0xb   :  { %v95_v21 = vadd.f32 %v94_v16, %v93_v18 }
   0xd   :  { %v97_v24 = vadd.f32 %v96_v19, %v95_v21 }
   0xf   :  { %v99_v27 = vadd.f32 %v98_v22, %v97_v24 }
  0x11   :  { %v101_v30 = vadd.f32 %v100_v25, %v99_v27 }
  0x13   :  { %v103_v33 = vadd.f32 %v102_v28, %v101_v30 }
  0x15   :  { %v105_v36 = vadd.f32 %v104_v31, %v103_v33 }
  0x17   :  { %v107_v39 = vadd.f32 %v106_v34, %v105_v36 }
  0x18   :  { %9 = vsyncpa [#allocation5], 0  ;;  %v110_v40 = vsel %vm84_vm1, %v610_v35, 0.0  ;;  %v624_v41 = vld [vmem:[%s1158_s0 + $0x78] sm:$0xff]  ;;  %v112_v43 = vsel %vm84_vm1, %v617_v38, 0.0  ;;  %v631_v44 = vld [vmem:[%s1158_s0 + $0x80] sm:$0xff]  ;;  %v222_v56 = vmul.f32 %v19_v0, %v19_v0  ;;  %v223_v57 = vmul.f32 %v20_v1, %v20_v1 }
  0x19   :  { %v109_v42 = vadd.f32 %v108_v37, %v107_v39  ;;  %v114_v46 = vsel %vm84_vm1, %v624_v41, 0.0  ;;  %v638_v47 = vld [vmem:[%s1158_s0 + $0x88] sm:$0xff]  ;;  %v116_v49 = vsel %vm84_vm1, %v631_v44, 0.0  ;;  %v645_v50 = vld [vmem:[%s1158_s0 + $0x90] sm:$0xff]  ;;  %v652_v53 = vld [vmem:[%s1158_s0 + $0x98] sm:$0xff]  ;;  %v224_v60 = vmul.f32 %v21_v2, %v21_v2 }
  0x1a   :  { %v118_v52 = vsel %vm84_vm1, %v638_v47, 0.0  ;;  %v120_v55 = vsel %vm84_vm1, %v645_v50, 0.0  ;;  %v659_v58 = vld [vmem:[%s1158_s0 + $0xa0] sm:$0xff]  ;;  %v122_v61 = vsel %vm84_vm1, %v652_v53, 0.0  ;;  %v225_v62 = vmul.f32 %v22_v4, %v22_v4  ;;  %v666_v63 = vld [vmem:[%s1158_s0 + $0xa8] sm:$0xff]  ;;  %v675_v2 = vld [vmem:[%s1158_s0 + $0xb0] sm:$0xff] }
  0x1b   :  { %v111_v45 = vadd.f32 %v110_v40, %v109_v42  ;;  %v124_v0 = vsel %vm84_vm1, %v659_v58, 0.0  ;;  %v226_v1 = vmul.f32 %v23_v8, %v23_v8  ;;  %v286_v5 = vsel %vm84_vm1, %v222_v56, 0.0  ;;  %v686_v13 = vld [vmem:[%s1158_s0 + $0xb8] sm:$0xff] }
  0x1c   :  { %v287_v6 = vsel %vm84_vm1, %v223_v57, 0.0  ;;  %v289_v9 = vsel %vm84_vm1, %v224_v60, 0.0  ;;  %v126_v10 = vsel %vm84_vm1, %v666_v63, 0.0  ;;  %v227_v12 = vmul.f32 %v555_v11, %v555_v11  ;;  %v696_v11 = vld [vmem:[%s1158_s0 + $0xc0] sm:$0xff] }
  0x1d   :  { %v113_v48 = vadd.f32 %v112_v43, %v111_v45  ;;  %v288_v7 = vadd.f32 %v287_v6, %v286_v5  ;;  %v291_v8 = vsel %vm84_vm1, %v225_v62, 0.0  ;;  %v128_v18 = vsel %vm84_vm1, %v675_v2, 0.0 }
  0x1e   :  { %v228_v19 = vmul.f32 %v561_v14, %v561_v14  ;;  %v293_v21 = vsel %vm84_vm1, %v226_v1, 0.0  ;;  %v130_v25 = vsel %vm84_vm1, %v686_v13, 0.0  ;;  %v229_v27 = vmul.f32 %v568_v17, %v568_v17  ;;  %v706_v14 = vld [vmem:[%s1158_s0 + $0xc8] sm:$0xff]  ;;  %v716_v17 = vld [vmem:[%s1158_s0 + $0xd0] sm:$0xff] }
  0x1f   :  { %v115_v51 = vadd.f32 %v114_v46, %v113_v48  ;;  %v290_v16 = vadd.f32 %v289_v9, %v288_v7  ;;  %v295_v28 = vsel %vm84_vm1, %v227_v12, 0.0  ;;  %v132_v33 = vsel %vm84_vm1, %v696_v11, 0.0 }
  0x20   :  { %v230_v34 = vmul.f32 %v575_v20, %v575_v20  ;;  %v297_v36 = vsel %vm84_vm1, %v228_v19, 0.0  ;;  %v134_v40 = vsel %vm84_vm1, %v706_v14, 0.0  ;;  %v231_v42 = vmul.f32 %v582_v23, %v582_v23  ;;  %v726_v20 = vld [vmem:[%s1158_s0 + $0xd8] sm:$0xff]  ;;  %v736_v23 = vld [vmem:[%s1158_s0 + $0xe0] sm:$0xff] }
  0x21   :  { %v117_v54 = vadd.f32 %v116_v49, %v115_v51  ;;  %v292_v24 = vadd.f32 %v291_v8, %v290_v16  ;;  %v299_v43 = vsel %vm84_vm1, %v229_v27, 0.0  ;;  %v136_v48 = vsel %vm84_vm1, %v716_v17, 0.0 }
  0x22   :  { %v232_v49 = vmul.f32 %v589_v26, %v589_v26  ;;  %v301_v51 = vsel %vm84_vm1, %v230_v34, 0.0  ;;  %v233_v56 = vmul.f32 %v596_v29, %v596_v29  ;;  %v303_v57 = vsel %vm84_vm1, %v231_v42, 0.0  ;;  %v746_v26 = vld [vmem:[%s1158_s0 + $0xe8] sm:$0xff]  ;;  %v756_v29 = vld [vmem:[%s1158_s0 + $0xf0] sm:$0xff] }
  0x23   :  { %v119_v59 = vadd.f32 %v118_v52, %v117_v54  ;;  %v294_v31 = vadd.f32 %v293_v21, %v292_v24  ;;  %v234_v62 = vmul.f32 %v603_v32, %v603_v32  ;;  %v142_v5 = vsel %vm84_vm1, %v746_v26, 0.0  ;;  %v766_v32 = vld [vmem:[%s1158_s0 + $0xf8] sm:$0xff] }
  0x24   :  { %v235_v6 = vmul.f32 %v610_v35, %v610_v35  ;;  %v236_v12 = vmul.f32 %v617_v38, %v617_v38  ;;  %v776_v35 = vld [vmem:[%s1158_s0 + $0x100] sm:$0xff]  ;;  %v237_v19 = vmul.f32 %v624_v41, %v624_v41  ;;  %v786_v38 = vld [vmem:[%s1158_s0 + $0x108] sm:$0xff]  ;;  %v238_v27 = vmul.f32 %v631_v44, %v631_v44  ;;  %v796_v41 = vld [vmem:[%s1158_s0 + $0x110] sm:$0xff] }
  0x25   :  { %v121_v3 = vadd.f32 %v120_v55, %v119_v59  ;;  %v296_v39 = vadd.f32 %v295_v28, %v294_v31  ;;  %v138_v55 = vsel %vm84_vm1, %v726_v20, 0.0  ;;  %v309_v8 = vsel %vm84_vm1, %v234_v62, 0.0  ;;  %v806_v44 = vld [vmem:[%s1158_s0 + $0x118] sm:$0xff] }
  0x26   :  { %v311_v21 = vsel %vm84_vm1, %v235_v6, 0.0  ;;  %v313_v28 = vsel %vm84_vm1, %v236_v12, 0.0  ;;  %v239_v34 = vmul.f32 %v638_v47, %v638_v47  ;;  %v240_v42 = vmul.f32 %v645_v50, %v645_v50  ;;  %v816_v47 = vld [vmem:[%s1158_s0 + $0x120] sm:$0xff]  ;;  %v826_v50 = vld [vmem:[%s1158_s0 + $0x128] sm:$0xff] }
  0x27   :  { %v123_v4 = vadd.f32 %v122_v61, %v121_v3  ;;  %v298_v46 = vadd.f32 %v297_v36, %v296_v39  ;;  %v140_v61 = vsel %vm84_vm1, %v736_v23, 0.0  ;;  %v305_v3 = vsel %vm84_vm1, %v232_v49, 0.0 }
  0x28   :  { %v315_v36 = vsel %vm84_vm1, %v237_v19, 0.0  ;;  %v241_v49 = vmul.f32 %v652_v53, %v652_v53  ;;  %v836_v53 = vld [vmem:[%s1158_s0 + $0x130] sm:$0xff]  ;;  %v243_v62 = vmul.f32 %v666_v63, %v666_v63  ;;  %v244_v6 = vmul.f32 %v675_v2, %v675_v2  ;;  %v856_v63 = vld [vmem:[%s1158_s0 + $0x140] sm:$0xff]  ;;  %v866_v2 = vld [vmem:[%s1158_s0 + $0x148] sm:$0xff] }
  0x29   :  { %v125_v15 = vadd.f32 %v124_v0, %v123_v4  ;;  %v300_v54 = vadd.f32 %v299_v43, %v298_v46  ;;  %v307_v4 = vsel %vm84_vm1, %v233_v56, 0.0  ;;  %v317_v43 = vsel %vm84_vm1, %v238_v27, 0.0 }
  0x2a   :  { %v242_v56 = vmul.f32 %v659_v58, %v659_v58  ;;  %v846_v58 = vld [vmem:[%s1158_s0 + $0x138] sm:$0xff]  ;;  %v245_v12 = vmul.f32 %v686_v13, %v686_v13  ;;  %v246_v19 = vmul.f32 %v696_v11, %v696_v11  ;;  %v876_v13 = vld [vmem:[%s1158_s0 + $0x150] sm:$0xff]  ;;  %v247_v27 = vmul.f32 %v706_v14, %v706_v14  ;;  %v896_v14 = vld [vmem:[%s1158_s0 + $0x160] sm:$0xff] }
  0x2b   :  { %v127_v22 = vadd.f32 %v126_v10, %v125_v15  ;;  %v302_v60 = vadd.f32 %v301_v51, %v300_v54  ;;  %v144_v10 = vsel %vm84_vm1, %v756_v29, 0.0  ;;  %v319_v51 = vsel %vm84_vm1, %v239_v34, 0.0  ;;  %v886_v11 = vld [vmem:[%s1158_s0 + $0x158] sm:$0xff] }
  0x2c   :  { %v248_v34 = vmul.f32 %v716_v17, %v716_v17  ;;  %v906_v17 = vld [vmem:[%s1158_s0 + $0x168] sm:$0xff] }
  0x2d   :  { %v129_v30 = vadd.f32 %v128_v18, %v127_v22  ;;  %v304_v1 = vadd.f32 %v303_v57, %v302_v60  ;;  %v146_v18 = vsel %vm84_vm1, %v766_v32, 0.0  ;;  %v321_v57 = vsel %vm84_vm1, %v240_v42, 0.0 }
  0x2e   :  { %v249_v42 = vmul.f32 %v726_v20, %v726_v20  ;;  %v916_v20 = vld [vmem:[%s1158_s0 + $0x170] sm:$0xff] }
  0x2f   :  { %v131_v37 = vadd.f32 %v130_v25, %v129_v30  ;;  %v306_v9 = vadd.f32 %v305_v3, %v304_v1  ;;  %v148_v25 = vsel %vm84_vm1, %v776_v35, 0.0  ;;  %v323_v3 = vsel %vm84_vm1, %v241_v49, 0.0 }
  0x30   :  { %v250_v49 = vmul.f32 %v736_v23, %v736_v23  ;;  %v926_v23 = vld [vmem:[%s1158_s0 + $0x178] sm:$0xff] }
  0x31   :  { %v133_v45 = vadd.f32 %v132_v33, %v131_v37  ;;  %v308_v16 = vadd.f32 %v307_v4, %v306_v9  ;;  %v150_v33 = vsel %vm84_vm1, %v786_v38, 0.0  ;;  %v325_v4 = vsel %vm84_vm1, %v242_v56, 0.0 }
  0x32   :  { %v251_v56 = vmul.f32 %v746_v26, %v746_v26  ;;  %v936_v26 = vld [vmem:[%s1158_s0 + $0x180] sm:$0xff] }
  0x33   :  { %v135_v52 = vadd.f32 %v134_v40, %v133_v45  ;;  %v310_v24 = vadd.f32 %v309_v8, %v308_v16  ;;  %v152_v40 = vsel %vm84_vm1, %v796_v41, 0.0  ;;  %v327_v8 = vsel %vm84_vm1, %v243_v62, 0.0 }
  0x34   :  { %v252_v62 = vmul.f32 %v756_v29, %v756_v29  ;;  %v946_v29 = vld [vmem:[%s1158_s0 + $0x188] sm:$0xff] }
  0x35   :  { %v137_v59 = vadd.f32 %v136_v48, %v135_v52  ;;  %v312_v31 = vadd.f32 %v311_v21, %v310_v24  ;;  %v154_v48 = vsel %vm84_vm1, %v806_v44, 0.0  ;;  %v329_v21 = vsel %vm84_vm1, %v244_v6, 0.0 }
  0x36   :  { %v253_v6 = vmul.f32 %v766_v32, %v766_v32  ;;  %v956_v32 = vld [vmem:[%s1158_s0 + $0x190] sm:$0xff] }
  0x37   :  { %v139_v0 = vadd.f32 %v138_v55, %v137_v59  ;;  %v314_v39 = vadd.f32 %v313_v28, %v312_v31  ;;  %v156_v55 = vsel %vm84_vm1, %v816_v47, 0.0  ;;  %v331_v28 = vsel %vm84_vm1, %v245_v12, 0.0 }
  0x38   :  { %v254_v12 = vmul.f32 %v776_v35, %v776_v35  ;;  %v966_v35 = vld [vmem:[%s1158_s0 + $0x198] sm:$0xff] }
  0x39   :  { %v141_v7 = vadd.f32 %v140_v61, %v139_v0  ;;  %v316_v46 = vadd.f32 %v315_v36, %v314_v39  ;;  %v158_v61 = vsel %vm84_vm1, %v826_v50, 0.0  ;;  %v333_v36 = vsel %vm84_vm1, %v246_v19, 0.0 }
  0x3a   :  { %v255_v19 = vmul.f32 %v786_v38, %v786_v38  ;;  %v976_v38 = vld [vmem:[%s1158_s0 + $0x1a0] sm:$0xff] }
  0x3b   :  { %v143_v15 = vadd.f32 %v142_v5, %v141_v7  ;;  %v318_v54 = vadd.f32 %v317_v43, %v316_v46  ;;  %v160_v5 = vsel %vm84_vm1, %v836_v53, 0.0  ;;  %v335_v43 = vsel %vm84_vm1, %v247_v27, 0.0 }
  0x3c   :  { %v256_v27 = vmul.f32 %v796_v41, %v796_v41  ;;  %v986_v41 = vld [vmem:[%s1158_s0 + $0x1a8] sm:$0xff] }
  0x3d   :  { %v145_v22 = vadd.f32 %v144_v10, %v143_v15  ;;  %v320_v60 = vadd.f32 %v319_v51, %v318_v54  ;;  %v162_v10 = vsel %vm84_vm1, %v846_v58, 0.0  ;;  %v337_v51 = vsel %vm84_vm1, %v248_v34, 0.0 }
  0x3e   :  { %v257_v34 = vmul.f32 %v806_v44, %v806_v44  ;;  %v996_v44 = vld [vmem:[%s1158_s0 + $0x1b0] sm:$0xff] }
  0x3f   :  { %v147_v30 = vadd.f32 %v146_v18, %v145_v22  ;;  %v322_v1 = vadd.f32 %v321_v57, %v320_v60  ;;  %v164_v18 = vsel %vm84_vm1, %v856_v63, 0.0  ;;  %v339_v57 = vsel %vm84_vm1, %v249_v42, 0.0 }
  0x40   :  { %v258_v42 = vmul.f32 %v816_v47, %v816_v47  ;;  %v1006_v47 = vld [vmem:[%s1158_s0 + $0x1b8] sm:$0xff] }
  0x41   :  { %v149_v37 = vadd.f32 %v148_v25, %v147_v30  ;;  %v324_v9 = vadd.f32 %v323_v3, %v322_v1  ;;  %v166_v25 = vsel %vm84_vm1, %v866_v2, 0.0  ;;  %v341_v3 = vsel %vm84_vm1, %v250_v49, 0.0 }
  0x42   :  { %v259_v49 = vmul.f32 %v826_v50, %v826_v50  ;;  %v1016_v50 = vld [vmem:[%s1158_s0 + $0x1c0] sm:$0xff] }
  0x43   :  { %v151_v45 = vadd.f32 %v150_v33, %v149_v37  ;;  %v326_v16 = vadd.f32 %v325_v4, %v324_v9  ;;  %v168_v33 = vsel %vm84_vm1, %v876_v13, 0.0  ;;  %v343_v4 = vsel %vm84_vm1, %v251_v56, 0.0 }
  0x44   :  { %v260_v56 = vmul.f32 %v836_v53, %v836_v53  ;;  %v1026_v53 = vld [vmem:[%s1158_s0 + $0x1c8] sm:$0xff] }
  0x45   :  { %v153_v52 = vadd.f32 %v152_v40, %v151_v45  ;;  %v328_v24 = vadd.f32 %v327_v8, %v326_v16  ;;  %v170_v40 = vsel %vm84_vm1, %v886_v11, 0.0  ;;  %v345_v8 = vsel %vm84_vm1, %v252_v62, 0.0 }
  0x46   :  { %v261_v62 = vmul.f32 %v846_v58, %v846_v58  ;;  %v1036_v58 = vld [vmem:[%s1158_s0 + $0x1d0] sm:$0xff] }
  0x47   :  { %v155_v59 = vadd.f32 %v154_v48, %v153_v52  ;;  %v330_v31 = vadd.f32 %v329_v21, %v328_v24  ;;  %v172_v48 = vsel %vm84_vm1, %v896_v14, 0.0  ;;  %v347_v21 = vsel %vm84_vm1, %v253_v6, 0.0 }
  0x48   :  { %v262_v6 = vmul.f32 %v856_v63, %v856_v63  ;;  %v1046_v63 = vld [vmem:[%s1158_s0 + $0x1d8] sm:$0xff] }
  0x49   :  { %v157_v0 = vadd.f32 %v156_v55, %v155_v59  ;;  %v332_v39 = vadd.f32 %v331_v28, %v330_v31  ;;  %v174_v55 = vsel %vm84_vm1, %v906_v17, 0.0  ;;  %v349_v28 = vsel %vm84_vm1, %v254_v12, 0.0 }
  0x4a   :  { %v263_v12 = vmul.f32 %v866_v2, %v866_v2  ;;  %v1056_v2 = vld [vmem:[%s1158_s0 + $0x1e0] sm:$0xff] }
  0x4b   :  { %v159_v7 = vadd.f32 %v158_v61, %v157_v0  ;;  %v334_v46 = vadd.f32 %v333_v36, %v332_v39  ;;  %v176_v61 = vsel %vm84_vm1, %v916_v20, 0.0  ;;  %v351_v36 = vsel %vm84_vm1, %v255_v19, 0.0 }
  0x4c   :  { %v264_v19 = vmul.f32 %v876_v13, %v876_v13  ;;  %v1066_v13 = vld [vmem:[%s1158_s0 + $0x1e8] sm:$0xff] }
  0x4d   :  { %v161_v15 = vadd.f32 %v160_v5, %v159_v7  ;;  %v336_v54 = vadd.f32 %v335_v43, %v334_v46  ;;  %v178_v5 = vsel %vm84_vm1, %v926_v23, 0.0  ;;  %v353_v43 = vsel %vm84_vm1, %v256_v27, 0.0 }
  0x4e   :  { %v265_v27 = vmul.f32 %v886_v11, %v886_v11  ;;  %v1076_v11 = vld [vmem:[%s1158_s0 + $0x1f0] sm:$0xff] }
  0x4f   :  { %v163_v22 = vadd.f32 %v162_v10, %v161_v15  ;;  %v338_v60 = vadd.f32 %v337_v51, %v336_v54  ;;  %v180_v10 = vsel %vm84_vm1, %v936_v26, 0.0  ;;  %v355_v51 = vsel %vm84_vm1, %v257_v34, 0.0 }
  0x50   :  { %v266_v34 = vmul.f32 %v896_v14, %v896_v14  ;;  %v1086_v14 = vld [vmem:[%s1158_s0 + $0x1f8] sm:$0xff]  ;;  %s514_s0 = smov [#allocation2]  }
  0x51   :  { %v165_v30 = vadd.f32 %v164_v18, %v163_v22  ;;  %v340_v1 = vadd.f32 %v339_v57, %v338_v60  ;;  %v182_v18 = vsel %vm84_vm1, %v946_v29, 0.0  ;;  %v357_v57 = vsel %vm84_vm1, %v258_v42, 0.0  ;;  %s442_s25 = sshll.u32 %s514_s0, 4  ;;  %s443_s25 = int_to_ptr.vmem [resolvable:$true] %s442_s25 }
  0x52   :  { %v267_v42 = vmul.f32 %v906_v17, %v906_v17  ;;  %v210_v17 = vsel %vm84_vm1, %v1086_v14, 0.0  ;;  %s469_s26 = scalar_lea.vmem %s443_s25, 16  ;;  %s473_s27 = scalar_lea.vmem %s443_s25, 32 }
  0x53   :  { %v167_v37 = vadd.f32 %v166_v25, %v165_v30  ;;  %v342_v9 = vadd.f32 %v341_v3, %v340_v1  ;;  %v184_v25 = vsel %vm84_vm1, %v956_v32, 0.0  ;;  %v359_v3 = vsel %vm84_vm1, %v259_v49, 0.0  ;;  %p470_p0 = scmp.ne.s32.totalorder %s443_s25, %s469_s26  ;;  %p474_p1 = scmp.lt.s32.totalorder %s443_s25, %s443_s25 }
  0x54   :  { %v268_v49 = vmul.f32 %v916_v20, %v916_v20  ;;  %p475_p2 = scmp.lt.s32.totalorder %s473_s27, %s469_s26 }
  0x55   :  { %v169_v45 = vadd.f32 %v168_v33, %v167_v37  ;;  %v344_v16 = vadd.f32 %v343_v4, %v342_v9  ;;  %v186_v33 = vsel %vm84_vm1, %v966_v35, 0.0  ;;  %v361_v4 = vsel %vm84_vm1, %v260_v56, 0.0 }
  0x56   :  { %v375_v56 = vsel %vm84_vm1, %v267_v42, 0.0  ;;  %p476_p3 = por %p475_p2, %p474_p1 }
  0x57   :  { %v171_v52 = vadd.f32 %v170_v40, %v169_v45  ;;  %v346_v24 = vadd.f32 %v345_v8, %v344_v16  ;;  %v188_v40 = vsel %vm84_vm1, %v976_v38, 0.0  ;;  %v363_v8 = vsel %vm84_vm1, %v261_v62, 0.0 }
  0x58   :  { %p477_p4 = pnand %p476_p3, %p470_p0 }
  0x59   :  { %v173_v59 = vadd.f32 %v172_v48, %v171_v52  ;;  %v348_v31 = vadd.f32 %v347_v21, %v346_v24  ;;  %v190_v48 = vsel %vm84_vm1, %v986_v41, 0.0  ;;  %v365_v21 = vsel %vm84_vm1, %v262_v6, 0.0 }
  0x5b   :  { %v175_v0 = vadd.f32 %v174_v55, %v173_v59  ;;  %v350_v39 = vadd.f32 %v349_v28, %v348_v31  ;;  %v192_v55 = vsel %vm84_vm1, %v996_v44, 0.0  ;;  %v367_v28 = vsel %vm84_vm1, %v263_v12, 0.0 }
  0x5d   :  { %v177_v7 = vadd.f32 %v176_v61, %v175_v0  ;;  %v352_v46 = vadd.f32 %v351_v36, %v350_v39  ;;  %v194_v61 = vsel %vm84_vm1, %v1006_v47, 0.0  ;;  %v369_v36 = vsel %vm84_vm1, %v264_v19, 0.0 }
  0x5f   :  { %v179_v15 = vadd.f32 %v178_v5, %v177_v7  ;;  %v354_v54 = vadd.f32 %v353_v43, %v352_v46  ;;  %v196_v5 = vsel %vm84_vm1, %v1016_v50, 0.0  ;;  %v371_v43 = vsel %vm84_vm1, %v265_v27, 0.0 }
  0x61   :  { %v181_v22 = vadd.f32 %v180_v10, %v179_v15  ;;  %v356_v60 = vadd.f32 %v355_v51, %v354_v54  ;;  %v198_v10 = vsel %vm84_vm1, %v1026_v53, 0.0  ;;  %v373_v51 = vsel %vm84_vm1, %v266_v34, 0.0 }
  0x63   :  { %v183_v30 = vadd.f32 %v182_v18, %v181_v22  ;;  %v358_v1 = vadd.f32 %v357_v57, %v356_v60  ;;  %v200_v18 = vsel %vm84_vm1, %v1036_v58, 0.0  ;;  %v270_v60 = vmul.f32 %v936_v26, %v936_v26 }
  0x64   :  { %v273_v26 = vmul.f32 %v966_v35, %v966_v35  ;;  %v276_v35 = vmul.f32 %v996_v44, %v996_v44  ;;  %v279_v44 = vmul.f32 %v1026_v53, %v1026_v53  ;;  %v282_v53 = vmul.f32 %v1056_v2, %v1056_v2 }
  0x65   :  { %v185_v37 = vadd.f32 %v184_v25, %v183_v30  ;;  %v360_v9 = vadd.f32 %v359_v3, %v358_v1  ;;  %v202_v25 = vsel %vm84_vm1, %v1046_v63, 0.0  ;;  %v271_v3 = vmul.f32 %v946_v29, %v946_v29 }
  0x66   :  { %v381_v6 = vsel %vm84_vm1, %v270_v60, 0.0  ;;  %v274_v29 = vmul.f32 %v976_v38, %v976_v38  ;;  %v277_v38 = vmul.f32 %v1006_v47, %v1006_v47  ;;  %v280_v47 = vmul.f32 %v1036_v58, %v1036_v58 }
  0x67   :  { %v187_v45 = vadd.f32 %v186_v33, %v185_v37  ;;  %v362_v16 = vadd.f32 %v361_v4, %v360_v9  ;;  %v204_v33 = vsel %vm84_vm1, %v1056_v2, 0.0  ;;  %v383_v9 = vsel %vm84_vm1, %v271_v3, 0.0 }
  0x68   :  { %v399_v42 = vsel %vm84_vm1, %v279_v44, 0.0  ;;  %v283_v58 = vmul.f32 %v1066_v13, %v1066_v13 }
  0x69   :  { %v189_v52 = vadd.f32 %v188_v40, %v187_v45  ;;  %v364_v24 = vadd.f32 %v363_v8, %v362_v16  ;;  %v206_v40 = vsel %vm84_vm1, %v1066_v13, 0.0 }
  0x6b   :  { %v191_v59 = vadd.f32 %v190_v48, %v189_v52  ;;  %v366_v31 = vadd.f32 %v365_v21, %v364_v24  ;;  %v208_v48 = vsel %vm84_vm1, %v1076_v11, 0.0  ;;  %v389_v24 = vsel %vm84_vm1, %v274_v29, 0.0 }
  0x6d   :  { %v193_v0 = vadd.f32 %v192_v55, %v191_v59  ;;  %v368_v39 = vadd.f32 %v367_v28, %v366_v31  ;;  %v269_v55 = vmul.f32 %v926_v23, %v926_v23  ;;  %v272_v23 = vmul.f32 %v956_v32, %v956_v32 }
  0x6e   :  { %v275_v32 = vmul.f32 %v986_v41, %v986_v41  ;;  %v278_v41 = vmul.f32 %v1016_v50, %v1016_v50  ;;  %v281_v50 = vmul.f32 %v1046_v63, %v1046_v63 }
  0x6f   :  { %v195_v7 = vadd.f32 %v194_v61, %v193_v0  ;;  %v370_v46 = vadd.f32 %v369_v36, %v368_v39  ;;  %v377_v61 = vsel %vm84_vm1, %v268_v49, 0.0  ;;  %v379_v0 = vsel %vm84_vm1, %v269_v55, 0.0 }
  0x70   :  { %v385_v8 = vsel %vm84_vm1, %v272_v23, 0.0  ;;  %v391_v28 = vsel %vm84_vm1, %v275_v32, 0.0  ;;  %v395_v36 = vsel %vm84_vm1, %v277_v38, 0.0  ;;  %v397_v39 = vsel %vm84_vm1, %v278_v41, 0.0 }
  0x71   :  { %v197_v15 = vadd.f32 %v196_v5, %v195_v7  ;;  %v372_v54 = vadd.f32 %v371_v43, %v370_v46 }
  0x73   :  { %v199_v22 = vadd.f32 %v198_v10, %v197_v15  ;;  %v374_v59 = vadd.f32 %v373_v51, %v372_v54  ;;  %v403_v51 = vsel %vm84_vm1, %v281_v50, 0.0  ;;  %v405_v54 = vsel %vm84_vm1, %v282_v53, 0.0 }
  0x75   :  { %v201_v30 = vadd.f32 %v200_v18, %v199_v22  ;;  %v376_v62 = vadd.f32 %v375_v56, %v374_v59  ;;  %v387_v18 = vsel %vm84_vm1, %v273_v26, 0.0  ;;  %v83_v22 = vld [vmem:[#allocation2] sm:$0x1] }
  0x77   :  { %v203_v37 = vadd.f32 %v202_v25, %v201_v30  ;;  %v378_v5 = vadd.f32 %v377_v61, %v376_v62 }
  0x79   :  { %v205_v45 = vadd.f32 %v204_v33, %v203_v37  ;;  %v380_v7 = vadd.f32 %v379_v0, %v378_v5  ;;  %v393_v33 = vsel %vm84_vm1, %v276_v35, 0.0 }
  0x7b   :  { %v207_v52 = vadd.f32 %v206_v40, %v205_v45  ;;  %v382_v12 = vadd.f32 %v381_v6, %v380_v7  ;;  %v401_v45 = vsel %vm84_vm1, %v280_v47, 0.0 }
  0x7d   :  { %v209_v57 = vadd.f32 %v208_v48, %v207_v52  ;;  %v384_v16 = vadd.f32 %v383_v9, %v382_v12  ;;  %v284_v52 = vmul.f32 %v1076_v11, %v1076_v11 }
  0x7f   :  { %v211_v20 = vadd.f32 %v210_v17, %v209_v57  ;;  %v386_v21 = vadd.f32 %v385_v8, %v384_v16 }
  0x81   :  { %v212_v1 = vrot.slane %v211_v20, 4  ;;  %v388_v27 = vadd.f32 %v387_v18, %v386_v21 }
  0x83   :  { %v213_v4 = vadd.f32 %v212_v1, %v211_v20  ;;  %v390_v31 = vadd.f32 %v389_v24, %v388_v27 }
  0x85   :  { %v214_v10 = vrot.slane %v213_v4, 2  ;;  %v392_v34 = vadd.f32 %v391_v28, %v390_v31 }
  0x87   :  { %v215_v15 = vadd.f32 %v214_v10, %v213_v4  ;;  %v394_v37 = vadd.f32 %v393_v33, %v392_v34 }
  0x89   :  { %v216_v19 = vrot.slane %v215_v15, 1  ;;  %v396_v40 = vadd.f32 %v395_v36, %v394_v37 }
  0x8b   :  { %v217_v25 = vadd.f32 %v216_v19, %v215_v15  ;;  %v398_v43 = vadd.f32 %v397_v39, %v396_v40 }
  0x8d   :  { %v218_v30 = vadd.f32 %v217_v25, %v83_v22  ;;  %v400_v48 = vadd.f32 %v399_v42, %v398_v43 }
  0x8f   :  { %220 = vst.msk [vmem:[#allocation2] sm:$0x1] %vm16_vm0, %v218_v30  ;;  %v402_v63 = vadd.f32 %v401_v45, %v400_v48 }
  0x96   :  { %v424_v46 = vld [vmem:[#allocation2] sm:$0x1] }
  0x97   :  { %v426_v49 = vmul.f32 0.001953125, %v424_v46 }
  0x99   :  { %432 = vst.msk [vmem:[#allocation2] sm:$0x1] %vm16_vm0, %v426_v49 }
  0x9a   :  { %480 = shalt.err (!%p477_p4)
}
  0x9b   :  { %445 = dma.vmem_to_hbm [thread:$0]  %s443_s25, 16, %s1159_s1, [#allocation3]   ;;  %v404_v2 = vadd.f32 %v403_v51, %v402_v63  ;;  %v285_v13 = vmul.f32 %v1086_v14, %v1086_v14  ;;  %v407_v11 = vsel %vm84_vm1, %v283_v58, 0.0  ;;  %v409_v55 = vsel %vm84_vm1, %v284_v52, 0.0  ;;  %v221_v1 = vld [vmem:[#allocation4] sm:$0x1] }
  0x9c   :  { %v429_v14 = vmul.f32 %v426_v49, %v426_v49  ;;  %s515_s1 = smov [#allocation4]  }
  0x9d   :  { %v406_v17 = vadd.f32 %v405_v54, %v404_v2  ;;  %v411_v57 = vsel %vm84_vm1, %v285_v13, 0.0  ;;  %s452_s30 = sshll.u32 %s515_s1, 4  ;;  %s453_s30 = int_to_ptr.vmem [resolvable:$true] %s452_s30 }
  0x9e   :  { %s489_s3 = scalar_lea.vmem %s453_s30, 16  ;;  %s493_s4 = scalar_lea.vmem %s453_s30, 32 }
  0x9f   :  { %v408_v56 = vadd.f32 %v407_v11, %v406_v17  ;;  %p490_p5 = scmp.ne.s32.totalorder %s453_s30, %s489_s3  ;;  %p494_p6 = scmp.lt.s32.totalorder %s453_s30, %s453_s30 }
  0xa0   :  { %p495_p7 = scmp.lt.s32.totalorder %s493_s4, %s489_s3 }
  0xa1   :  { %v410_v59 = vadd.f32 %v409_v55, %v408_v56 }
  0xa2   :  { %p496_p8 = por %p495_p7, %p494_p6 }
  0xa3   :  { %v412_v60 = vadd.f32 %v411_v57, %v410_v59 }
  0xa4   :  { %p497_p9 = pnand %p496_p8, %p490_p5 }
  0xa5   :  { %v413_v61 = vrot.slane %v412_v60, 4 }
  0xa7   :  { %v414_v20 = vadd.f32 %v413_v61, %v412_v60 }
  0xa9   :  { %v415_v62 = vrot.slane %v414_v20, 2 }
  0xab   :  { %v416_v3 = vadd.f32 %v415_v62, %v414_v20 }
  0xad   :  { %v417_v0 = vrot.slane %v416_v3, 1 }
  0xaf   :  { %v418_v5 = vadd.f32 %v417_v0, %v416_v3 }
  0xb1   :  { %v419_v23 = vadd.f32 %v418_v5, %v221_v1 }
  0xb3   :  { %420 = vst.msk [vmem:[#allocation4] sm:$0x1] %vm16_vm0, %v419_v23 }
  0xba   :  { %v427_v6 = vld [vmem:[#allocation4] sm:$0x1] }
  0xbb   :  { %v428_v4 = vmul.f32 0.001953125, %v427_v6 }
  0xbd   :  { %v430_v7 = vsub.f32 %v428_v4, %v429_v14 }
  0xbf   :  { %v431_v26 = vmax.f32 %v430_v7, 0.0 }
  0xc1   :  { %v433_v9 = vadd.f32 1e-05, %v431_v26 }
  0xc3   :  { %467 = vrsqrt.f32 %v433_v9 }
  0xd0   :  { %v468_v10 = vpop.eup %467 }
  0xd1   :  { %435 = vst.msk [vmem:[#allocation4] sm:$0x1] %vm16_vm0, %v468_v10 }
  0xd2   :  { %500 = shalt.err (!%p497_p9)
}
  0xd3   :  { %455 = dma.vmem_to_hbm [thread:$0]  %s453_s30, 16, %s1160_s2, [#allocation5]  }
  0xd4   :  { %509 = dma.done.wait [#allocation3], 16  }
  0xd5   :  { %510 = vsyncadd [#allocation3], 4294967280 }
  0xd6   :  { %511 = dma.done.wait [#allocation5], 16  }
  0xd7   :  { %512 = vsyncadd [#allocation5], 4294967280 }
  0xd8   :  { %462 = vsyncpa [#allocation3], 1 }
  0xd9   :  { %463 = vsyncpa [#allocation5], 1 }

</bundles_post_ra>
